<compile_context>
chip_gen: v7x
topology: tpu7x:2x2x1
jax: 0.10.0
libtpu: 0.0.40
codegen_flags: <defaults>
</compile_context>

<pallas_src>
import jax
import jax.numpy as jnp
from jax import lax
from jax.experimental import pallas as pl
from jax.experimental.pallas import tpu as pltpu

_EPS = 1e-12                       # F.normalize default eps
_VMEM_LIMIT_BYTES = 40 << 20       # below v7x's 64 MiB physical VMEM
_RESIDENT_BUDGET_BYTES = 24 << 20  # fused-path working set (2x buffered)


def _round_up(x, m):
    return ((x + m - 1) // m) * m


def _pick_row_tile(batch, align, cap=512):
    """Smallest sublane-legal row tile covering the batch (capped), then split so
    the parallel grid has >=2 steps when the batch allows (v7x has 2 TCs)."""
    t = min(_round_up(batch, align), cap)
    if _round_up(batch, t) == t and batch > align:
        t = min(t, _round_up(-(-batch // 2), align))
    return t


def _compiler_params(semantics):
    return pltpu.CompilerParams(dimension_semantics=semantics,
                                vmem_limit_bytes=_VMEM_LIMIT_BYTES)


# ---------------------------------------------------------------------------
# Pass 1: y = L2_normalize(x @ W.T + b)   (text tower; img tower in fallback)
# ---------------------------------------------------------------------------
def _proj_norm_kernel(x_ref, w_ref, b_ref, o_ref):
    # MXU matmul with native (bf16) operands, f32 accumulation.
    y = lax.dot_general(x_ref[...], w_ref[...], (((1,), (1,)), ((), ())),
                        preferred_element_type=jnp.float32)
    y = y + b_ref[...]                                   # bias stays f32
    # F.normalize: y / max(||y||, eps) == y * rsqrt(max(||y||^2, eps^2))  (f32)
    sumsq = jnp.sum(y * y, axis=-1, keepdims=True)
    o_ref[...] = (y * lax.rsqrt(jnp.maximum(sumsq, _EPS * _EPS))).astype(o_ref.dtype)


def _project_and_normalize(x, w, b, *, tile_b, out_dtype):
    Bp, Dp = x.shape
    Ep = w.shape[0]
    return pl.pallas_call(
        _proj_norm_kernel,
        out_shape=jax.ShapeDtypeStruct((Bp, Ep), out_dtype),
        grid=(Bp // tile_b,),
        in_specs=[
            pl.BlockSpec((tile_b, Dp), lambda i: (i, 0)),
            pl.BlockSpec((Ep, Dp), lambda i: (0, 0)),    # weight resident
            pl.BlockSpec((1, Ep), lambda i: (0, 0)),     # bias resident
        ],
        out_specs=pl.BlockSpec((tile_b, Ep), lambda i: (i, 0)),
        compiler_params=_compiler_params(("parallel",)),
    )(x, w, b)


# ---------------------------------------------------------------------------
# Pass 2 (fused): per image tile — project + normalize + score vs resident txt_n
# ---------------------------------------------------------------------------
def _fused_img_score_kernel(x_ref, w_ref, b_ref, t_ref, o_ref):
    y = lax.dot_general(x_ref[...], w_ref[...], (((1,), (1,)), ((), ())),
                        preferred_element_type=jnp.float32)
    y = y + b_ref[...]
    sumsq = jnp.sum(y * y, axis=-1, keepdims=True)
    img_n = (y * lax.rsqrt(jnp.maximum(sumsq, _EPS * _EPS))).astype(t_ref.dtype)
    o_ref[...] = lax.dot_general(img_n, t_ref[...], (((1,), (1,)), ((), ())),
                                 preferred_element_type=jnp.float32)


def _fused_img_scores(x, w, b, txt_n, *, tile_b):
    Bp, Dp = x.shape
    Ep = w.shape[0]
    Btp = txt_n.shape[0]
    return pl.pallas_call(
        _fused_img_score_kernel,
        out_shape=jax.ShapeDtypeStruct((Bp, Btp), jnp.float32),
        grid=(Bp // tile_b,),
        in_specs=[
            pl.BlockSpec((tile_b, Dp), lambda i: (i, 0)),
            pl.BlockSpec((Ep, Dp), lambda i: (0, 0)),    # v_proj weight resident
            pl.BlockSpec((1, Ep), lambda i: (0, 0)),     # bias resident
            pl.BlockSpec((Btp, Ep), lambda i: (0, 0)),   # full txt_n resident
        ],
        out_specs=pl.BlockSpec((tile_b, Btp), lambda i: (i, 0)),
        compiler_params=_compiler_params(("parallel",)),
    )(x, w, b, txt_n)


# ---------------------------------------------------------------------------
# Pass 2 (fallback): tiled score matmul when txt_n cannot stay resident
# ---------------------------------------------------------------------------
def _score_kernel(img_ref, txt_ref, o_ref):
    o_ref[...] = lax.dot_general(img_ref[...], txt_ref[...],
                                 (((1,), (1,)), ((), ())),
                                 preferred_element_type=jnp.float32)


def _tiled_scores(img_n, txt_n, *, tm, tn):
    Bip, Ep = img_n.shape
    Btp, _ = txt_n.shape
    return pl.pallas_call(
        _score_kernel,
        out_shape=jax.ShapeDtypeStruct((Bip, Btp), jnp.float32),
        grid=(Bip // tm, Btp // tn),
        in_specs=[
            pl.BlockSpec((tm, Ep), lambda i, j: (i, 0)),
            pl.BlockSpec((tn, Ep), lambda i, j: (j, 0)),
        ],
        out_specs=pl.BlockSpec((tm, tn), lambda i, j: (i, j)),
        compiler_params=_compiler_params(("parallel", "parallel")),
    )(img_n, txt_n)


# ---------------------------------------------------------------------------
# Wrapper: CLIPDualModel.forward() retrieval head
# ---------------------------------------------------------------------------
def clip_dual_scores(img_feats, txt_feats, wv, bv, wl, bl,
                     *, compute_dtype=jnp.bfloat16, _force_tiled=False):
    """scores = normalize(img @ Wv.T + bv) @ normalize(txt @ Wl.T + bl).T

    compute_dtype=jnp.bfloat16 (default) keeps all MXU operands, intermediates
    and HBM traffic in bf16; bias add, L2 normalize and accumulation stay f32.
    Use compute_dtype=jnp.float32 when tight (1e-5) accuracy is required.
    """
    Bi, D = img_feats.shape
    Bt, _ = txt_feats.shape
    E = wv.shape[0]

    op_bytes = jnp.dtype(compute_dtype).itemsize
    align = 16 if op_bytes == 2 else 8          # sublane packing of compute dtype

    D_pad = _round_up(D, 128)
    E_pad = _round_up(E, 128)

    tm = _pick_row_tile(Bi, align)
    Bi_pad = _round_up(Bi, tm)

    # Fused-path VMEM budget: count 2 buffers per operand (Pallas double-buffers
    # even grid-invariant blocks), sized against v7x's 64 MiB VMEM.
    t_txt = _pick_row_tile(Bt, align)
    Bt_pad = _round_up(Bt, t_txt)
    fused_bytes = 2 * (tm * D_pad * op_bytes          # img tile
                       + E_pad * D_pad * op_bytes     # v_proj weight
                       + E_pad * 4                    # bias (f32)
                       + Bt_pad * E_pad * op_bytes    # resident txt_n
                       + tm * Bt_pad * 4)             # f32 score tile
    use_fused = (not _force_tiled) and fused_bytes <= _RESIDENT_BUDGET_BYTES
    tn = None
    if not use_fused:
        # Tiled score fallback: lane-dense (128-multiple) txt tiles.
        Bt_pad = _round_up(Bt, 128)
        tn = next(t for t in (512, 256, 128) if Bt_pad % t == 0)
        t_txt = tn

    # Wrapper-side zero padding (exact for the matmuls and the L2 norm);
    # operands carried in compute_dtype to halve DMA bytes, biases in f32.
    pad2 = lambda a, r, c: jnp.pad(a, ((0, r - a.shape[0]), (0, c - a.shape[1])))
    img_p = pad2(img_feats.astype(compute_dtype), Bi_pad, D_pad)
    txt_p = pad2(txt_feats.astype(compute_dtype), Bt_pad, D_pad)
    wv_p = pad2(wv.astype(compute_dtype), E_pad, D_pad)
    wl_p = pad2(wl.astype(compute_dtype), E_pad, D_pad)
    bv_p = pad2(bv.reshape(1, E).astype(jnp.float32), 1, E_pad)
    bl_p = pad2(bl.reshape(1, E).astype(jnp.float32), 1, E_pad)

    # Text tower: projected + normalized once, stored in compute_dtype so every
    # re-read in the score pass moves half the bytes.
    txt_n = _project_and_normalize(txt_p, wl_p, bl_p, tile_b=t_txt,
                                   out_dtype=compute_dtype)

    if use_fused:
        # Image projection + normalize fused with the score matmul: img_n never
        # round-trips HBM and there is one fewer pallas_call launch.
        scores = _fused_img_scores(img_p, wv_p, bv_p, txt_n, tile_b=tm)
    else:
        img_n = _project_and_normalize(img_p, wv_p, bv_p, tile_b=tm,
                                       out_dtype=compute_dtype)
        scores = _tiled_scores(img_n, txt_n, tm=tm, tn=tn)
    return scores[:Bi, :Bt]


def reference_scores(img_feats, txt_feats, wv, bv, wl, bl):
    img_p = img_feats @ wv.T + bv
    txt_p = txt_feats @ wl.T + bl
    norm = lambda x: x / jnp.maximum(
        jnp.sqrt(jnp.sum(x * x, axis=-1, keepdims=True)), _EPS)
    return norm(img_p) @ norm(txt_p).T


if __name__ == "__main__":
    key = jax.random.PRNGKey(0)
    k_img, k_txt, k_wv, k_bv, k_wl, k_bl = jax.random.split(key, 6)

    # Small, forward-consistent shapes:
    #   backbone.visual.output_dim = 32, cfg.task.decoder.embed_dim = 32
    #   batch of 8 images, 8 captions
    B_IMG, B_TXT, D_BACKBONE, E_EMBED = 8, 8, 32, 32

    # Synthetic backbone features (stand-in for encode_image / encode_text).
    img_feats = jax.random.normal(k_img, (B_IMG, D_BACKBONE), jnp.float32)
    txt_feats = jax.random.normal(k_txt, (B_TXT, D_BACKBONE), jnp.float32)

    # Deterministic nn.Linear-style init: U(-1/sqrt(in), 1/sqrt(in)).
    bound = 1.0 / (D_BACKBONE ** 0.5)
    wv = jax.random.uniform(k_wv, (E_EMBED, D_BACKBONE), jnp.float32, -bound, bound)
    bv = jax.random.uniform(k_bv, (E_EMBED,), jnp.float32, -bound, bound)
    wl = jax.random.uniform(k_wl, (E_EMBED, D_BACKBONE), jnp.float32, -bound, bound)
    bl = jax.random.uniform(k_bl, (E_EMBED,), jnp.float32, -bound, bound)

    ref = reference_scores(img_feats, txt_feats, wv, bv, wl, bl)

    # f32 path: tight tolerance vs reference.
    scores_f32 = clip_dual_scores(img_feats, txt_feats, wv, bv, wl, bl,
                                  compute_dtype=jnp.float32)
    scores_f32 = jax.block_until_ready(scores_f32)
    assert scores_f32.shape == (B_IMG, B_TXT)
    assert jnp.allclose(scores_f32, ref, atol=1e-5, rtol=1e-5), "f32 mismatch"

    # Default bf16 operand path (fused: resident txt_n + weights).
    scores_bf16 = clip_dual_scores(img_feats, txt_feats, wv, bv, wl, bl)
    scores_bf16 = jax.block_until_ready(scores_bf16)
    assert scores_bf16.shape == (B_IMG, B_TXT)
    assert jnp.allclose(scores_bf16, ref, atol=1e-1), "bf16 fused mismatch"

    # Tiled fallback path (used when txt_n residency would exceed VMEM budget).
    scores_tiled = clip_dual_scores(img_feats, txt_feats, wv, bv, wl, bl,
                                    _force_tiled=True)
    scores_tiled = jax.block_until_ready(scores_tiled)
    assert scores_tiled.shape == (B_IMG, B_TXT)
    assert jnp.allclose(scores_tiled, ref, atol=1e-1), "bf16 tiled mismatch"

    print("KERNEL_OK")
</pallas_src>

<mosaic_0001>
module attributes {stable_mosaic.version = 11 : i64} {
  func.func @_proj_norm_kernel(%arg0: i32, %arg1: memref<8x128xf32, #tpu.memory_space<vmem>>, %arg2: memref<128x128xf32, #tpu.memory_space<vmem>>, %arg3: memref<1x128xf32, #tpu.memory_space<vmem>>, %arg4: memref<8x128xf32, #tpu.memory_space<vmem>>) attributes {dimension_semantics = [#tpu.dimension_semantics<parallel>], iteration_bounds = array<i64: 1>, scalar_prefetch = 0 : i64, scratch_operands = 0 : i64, tpu.core_type = #tpu.core_type<tc>, window_params = [{transform_indices = @transform_0, window_bounds = array<i64: 8, 128>}, {pipeline_mode = #tpu.pipeline_mode<synchronous>, transform_indices = @transform_1, window_bounds = array<i64: 128, 128>}, {pipeline_mode = #tpu.pipeline_mode<synchronous>, transform_indices = @transform_2, window_bounds = array<i64: 1, 128>}, {transform_indices = @transform_3, window_bounds = array<i64: 8, 128>}]} {
    %c0 = arith.constant 0 : index
    %c0_0 = arith.constant 0 : index
    %0 = vector.load %arg1[%c0, %c0_0] : memref<8x128xf32, #tpu.memory_space<vmem>>, vector<8x128xf32>
    %c0_1 = arith.constant 0 : index
    %c0_2 = arith.constant 0 : index
    %1 = vector.load %arg2[%c0_1, %c0_2] : memref<128x128xf32, #tpu.memory_space<vmem>>, vector<128x128xf32>
    %cst = arith.constant dense<0.000000e+00> : vector<8x128xf32>
    %2 = tpu.matmul %0, %1, %cst {dimension_numbers = #tpu.dot_dimension_numbers<[1], [1], [0], [0], [0, 0, 1, 0], [], []>} : vector<8x128xf32>, vector<128x128xf32>, vector<8x128xf32> -> vector<8x128xf32>
    %c0_3 = arith.constant 0 : index
    %c0_4 = arith.constant 0 : index
    %3 = vector.load %arg3[%c0_3, %c0_4] : memref<1x128xf32, #tpu.memory_space<vmem>>, vector<1x128xf32>
    %4 = vector.broadcast %3 : vector<1x128xf32> to vector<8x128xf32>
    %5 = arith.addf %2, %4 : vector<8x128xf32>
    %6 = arith.mulf %5, %5 : vector<8x128xf32>
    %cst_5 = arith.constant dense<0.000000e+00> : vector<8xf32>
    %7 = vector.multi_reduction <add>, %6, %cst_5 [1] : vector<8x128xf32> to vector<8xf32>
    %8 = vector.shape_cast %7 : vector<8xf32> to vector<8x1xf32>
    %cst_6 = arith.constant 1.000000e-24 : f32
    %9 = vector.broadcast %cst_6 : f32 to vector<8x1xf32>
    %10 = arith.maximumf %8, %9 : vector<8x1xf32>
    %11 = math.rsqrt %10 : vector<8x1xf32>
    %12 = vector.broadcast %11 : vector<8x1xf32> to vector<8x128xf32>
    %13 = arith.mulf %5, %12 : vector<8x128xf32>
    %c0_7 = arith.constant 0 : index
    %c0_8 = arith.constant 0 : index
    %14 = vector.load %arg4[%c0_7, %c0_8] : memref<8x128xf32, #tpu.memory_space<vmem>>, vector<8x128xf32>
    tpu.vector_store %arg4[%c0_7, %c0_8], %13 {strides = array<i32>} : memref<8x128xf32, #tpu.memory_space<vmem>>, vector<8x128xf32>,
    return
  }
  func.func @transform_0(%arg0: i32) -> (i32, i32) {
    %c0_i32 = arith.constant 0 : i32
    %c0_i32_0 = arith.constant 0 : i32
    return %arg0, %c0_i32 : i32, i32
  }
  func.func @transform_1(%arg0: i32) -> (i32, i32) {
    %c0_i32 = arith.constant 0 : i32
    %c0_i32_0 = arith.constant 0 : i32
    %c0_i32_1 = arith.constant 0 : i32
    return %c0_i32, %c0_i32_0 : i32, i32
  }
  func.func @transform_2(%arg0: i32) -> (i32, i32) {
    %c0_i32 = arith.constant 0 : i32
    %c0_i32_0 = arith.constant 0 : i32
    %c0_i32_1 = arith.constant 0 : i32
    return %c0_i32, %c0_i32_0 : i32, i32
  }
  func.func @transform_3(%arg0: i32) -> (i32, i32) {
    %c0_i32 = arith.constant 0 : i32
    %c0_i32_0 = arith.constant 0 : i32
    return %arg0, %c0_i32 : i32, i32
  }
}

</mosaic_0001>

<bundles_post_ra>
// kernel: tpu_custom_call.1
= control target key start
LH: loop header
LB: loop body
LE: loop exit
PB: predicated region body
PF: predicated region fallthrough
CT: control target
= control target key end

     0   :  { %8 = vsyncpa [#allocation3], 0  ;;  %s391_s0 = inlined_call_operand.hbm [shape: f32[8,128], index: 0, kind: input, shape index: {}]   ;;  %s392_s1 = inlined_call_operand.hbm [shape: f32[128,128], index: 1, kind: input, shape index: {}]   ;;  %s393_s2 = inlined_call_operand.vmem [shape: f32[1,128], index: 2, kind: input, shape index: {}]   ;;  %s394_s3 = inlined_call_operand.hbm [shape: f32[8,128], index: 3, kind: output, shape index: {}]  }
   0x1   :  { %9 = vsyncpa [#allocation6], 0 }
   0x2   :  { %10 = vsyncpa [#allocation4], 0  ;;  %s317_s12 = smov [#allocation2]   ;;  %s318_s14 = smov [#allocation5]  }
   0x3   :  { %s17_s13 = sshll.u32 %s317_s12, 4  ;;  %s26_s15 = sshll.u32 %s318_s14, 4  ;;  %s18_s13 = int_to_ptr.vmem [resolvable:$true] %s17_s13  ;;  %s345_s15 = int_to_ptr.vmem [resolvable:$true] %s26_s15 }
   0x4   :  { %s245_s18 = scalar_lea.hbm %s391_s0, 128 }
   0x5   :  { %p246_p0 = scmp.ne.s32.totalorder %s391_s0, %s245_s18  ;;  %p249_p1 = scmp.lt.u32.totalorder %s245_s18, %s391_s0 }
   0x7   :  { %p251_p2 = pnand %p249_p1, %p246_p0 }
   0x9   :  { %254 = shalt.err (!%p251_p2)
}
   0xa   :  { %s255_s23 = scalar_lea.vmem %s18_s13, 128  ;;  %p260_p4 = scmp.lt.s32.totalorder %s18_s13, %s18_s13 }
   0xb   :  { %p256_p3 = scmp.ne.s32.totalorder %s18_s13, %s255_s23  ;;  %p261_p5 = scmp.lt.s32.totalorder %s255_s23, %s255_s23 }
   0xd   :  { %p262_p6 = por %p261_p5, %p260_p4 }
   0xf   :  { %p263_p7 = pnand %p262_p6, %p256_p3 }
  0x11   :  { %266 = shalt.err (!%p263_p7)
}
  0x12   :  { %20 = dma.hbm_to_vmem [thread:$0]  %s391_s0, 128, %s18_s13, [#allocation3]  }
  0x13   :  { %s267_s28 = scalar_lea.hbm %s392_s1, 2048 }
  0x14   :  { %p268_p8 = scmp.ne.s32.totalorder %s392_s1, %s267_s28  ;;  %p271_p9 = scmp.lt.u32.totalorder %s267_s28, %s392_s1 }
  0x16   :  { %p273_p10 = pnand %p271_p9, %p268_p8 }
  0x18   :  { %276 = shalt.err (!%p273_p10)
}
  0x19   :  { %s277_s6 = scalar_lea.vmem %s345_s15, 2048  ;;  %p282_p12 = scmp.lt.s32.totalorder %s345_s15, %s345_s15 }
  0x1a   :  { %p278_p11 = scmp.ne.s32.totalorder %s345_s15, %s277_s6  ;;  %p283_p13 = scmp.lt.s32.totalorder %s277_s6, %s277_s6 }
  0x1c   :  { %p284_p0 = por %p283_p13, %p282_p12 }
  0x1e   :  { %p285_p1 = pnand %p284_p0, %p278_p11 }
  0x20   :  { %288 = shalt.err (!%p285_p1)
}
  0x21   :  { %s319_s0 = smov 128   ;;  %s320_s7 = smov 8  }
  0x22   :  { %32 = dma.hbm_to_vmem [thread:$0]  %s392_s1, 2048, %s345_s15, [#allocation6], %s319_s0, %s319_s0, %s320_s7  }
  0x23   :  { %311 = dma.done.wait [#allocation3], 128  }
  0x24   :  { %312 = vsyncadd [#allocation3], 4294967168 }
  0x25   :  { %313 = dma.done.wait [#allocation6], 2048  }
  0x26   :  { %314 = vsyncadd [#allocation6], 4294965248  ;;  %v321_v0 = vmov 0.0|0.0   ;;  %vm322_vm0 = vmmov 0   ;;  %v323_v1 = vmov 0.0   ;;  %v42_v2 = vld [vmem:[#allocation5] sm:$0xff] }
  0x27   :  { %211 = vmatprep.subr.bf16.mxu0 %v321_v0  ;;  %208 = vmatprep.mubr.msk.f32.mxu0 %vm322_vm0, %v323_v1  ;;  %v43_v3 = vld [vmem:[#allocation5 + $0x8] sm:$0xff]  ;;  %v44_v5 = vld [vmem:[#allocation5 + $0x10] sm:$0xff]  ;;  %v45_v6 = vld [vmem:[#allocation5 + $0x18] sm:$0xff]  ;;  %s324_s11 = smov [#allocation7]  }
  0x28   :  { %v212_v4 = vpack.c.bf16 %v43_v3, %v42_v2  ;;  %v215_v7 = vpack.c.bf16 %v45_v6, %v44_v5  ;;  %v46_v8 = vld [vmem:[#allocation5 + $0x20] sm:$0xff]  ;;  %v47_v9 = vld [vmem:[#allocation5 + $0x28] sm:$0xff]  ;;  %v48_v11 = vld [vmem:[#allocation5 + $0x30] sm:$0xff]  ;;  %s148_s12 = sshll.u32 %s324_s11, 4  ;;  %s149_s12 = int_to_ptr.vmem [resolvable:$true] %s148_s12 }
  0x29   :  { %v218_v10 = vpack.c.bf16 %v47_v9, %v46_v8  ;;  %v49_v12 = vld [vmem:[#allocation5 + $0x38] sm:$0xff]  ;;  %v50_v14 = vld [vmem:[#allocation5 + $0x40] sm:$0xff]  ;;  %v51_v15 = vld [vmem:[#allocation5 + $0x48] sm:$0xff]  ;;  %s289_s13 = scalar_lea.vmem %s149_s12, 128  ;;  %p294_p3 = scmp.lt.s32.totalorder %s149_s12, %s149_s12 }
  0x2a   :  { %213 = vmatpush3.bf16.xpose.msra.mxu0 %v212_v4  ;;  %v221_v13 = vpack.c.bf16 %v49_v12, %v48_v11  ;;  %v224_v16 = vpack.c.bf16 %v51_v15, %v50_v14  ;;  %v52_v17 = vld [vmem:[#allocation5 + $0x50] sm:$0xff]  ;;  %v53_v18 = vld [vmem:[#allocation5 + $0x58] sm:$0xff]  ;;  %v54_v20 = vld [vmem:[#allocation5 + $0x60] sm:$0xff]  ;;  %p290_p2 = scmp.ne.s32.totalorder %s149_s12, %s289_s13  ;;  %p295_p4 = scmp.lt.s32.totalorder %s289_s13, %s289_s13 }
  0x2b   :  { %214 = vmatprep.subr.bf16.mxu0 %v321_v0  ;;  %v227_v19 = vpack.c.bf16 %v53_v18, %v52_v17  ;;  %v55_v21 = vld [vmem:[#allocation5 + $0x68] sm:$0xff]  ;;  %v56_v23 = vld [vmem:[#allocation5 + $0x70] sm:$0xff]  ;;  %v57_v24 = vld [vmem:[#allocation5 + $0x78] sm:$0xff] }
  0x2c   :  { %v230_v22 = vpack.c.bf16 %v55_v21, %v54_v20  ;;  %v233_v25 = vpack.c.bf16 %v57_v24, %v56_v23  ;;  %v41_v26 = vld [vmem:[#allocation2] sm:$0xff]  ;;  %p296_p5 = por %p295_p4, %p294_p3 }
  0x2d   :  { %v158_v27 = vld [vmem:[%s393_s2] ss:$0 sm:$0xff] }
  0x2e   :  { %p297_p6 = pnand %p296_p5, %p290_p2 }
  0x32   :  { %216 = vmatpush3.bf16.xpose.msra.mxu0 %v215_v7 }
  0x33   :  { %217 = vmatprep.subr.bf16.mxu0 %v321_v0 }
  0x3a   :  { %219 = vmatpush3.bf16.xpose.msra.mxu0 %v218_v10 }
  0x3b   :  { %220 = vmatprep.subr.bf16.mxu0 %v321_v0 }
  0x42   :  { %222 = vmatpush3.bf16.xpose.msra.mxu0 %v221_v13 }
  0x43   :  { %223 = vmatprep.subr.bf16.mxu0 %v321_v0 }
  0x4a   :  { %225 = vmatpush3.bf16.xpose.msra.mxu0 %v224_v16 }
  0x4b   :  { %226 = vmatprep.subr.bf16.mxu0 %v321_v0 }
  0x52   :  { %228 = vmatpush3.bf16.xpose.msra.mxu0 %v227_v19 }
  0x53   :  { %229 = vmatprep.subr.bf16.mxu0 %v321_v0 }
  0x5a   :  { %231 = vmatpush3.bf16.xpose.msra.mxu0 %v230_v22 }
  0x5b   :  { %232 = vmatprep.subr.bf16.mxu0 %v321_v0 }
  0x62   :  { %234 = vmatpush3.bf16.xpose.msra.mxu0 %v233_v25 }
  0x69   :  { %209 = vmatmul.mubr.f32.vlgmr.msra.gmra.mrb[0].mxu0 %v41_v26 }
 0x13c   :  { %v131_v28 = vpop.f32.mrb[0].mxu0 }
 0x13d   :  { %v132_v29 = vadd.f32 %v158_v27, %v131_v28  ;;  %v210_v30 = vpop.f32.mrb[1].mxu0 }
 0x13f   :  { %v135_v31 = vmul.f32 %v132_v29, %v132_v29 }
 0x141   :  { %136 = vadd.xlane.f32.xlu0 %v135_v31 }
 0x1ce   :  { %v137_v32 = vpop.xlane.xlu0 %136 }
 0x1cf   :  { %v138_v33 = vmax.f32 %v137_v32, 1e-24 }
 0x1d1   :  { %243 = vrsqrt.f32 %v138_v33 }
 0x1db   :  { %v244_v34 = vpop.eup %243 }
 0x1dc   :  { %v140_v35 = vmul.f32 %v244_v34, %v132_v29 }
 0x1de   :  { %141 = vst [vmem:[#allocation7] sm:$0xff] %v140_v35 }
 0x1df   :  { %300 = shalt.err (!%p297_p6)
}
 0x1e0   :  { %s301_s15 = scalar_lea.hbm %s394_s3, 128 }
 0x1e1   :  { %p302_p7 = scmp.ne.s32.totalorder %s394_s3, %s301_s15  ;;  %p305_p8 = scmp.lt.u32.totalorder %s301_s15, %s394_s3 }
 0x1e3   :  { %p307_p9 = pnand %p305_p8, %p302_p7 }
 0x1e5   :  { %310 = shalt.err (!%p307_p9)
}
 0x1e6   :  { %151 = dma.vmem_to_hbm [thread:$0]  %s149_s12, 128, %s394_s3, [#allocation4]  }
 0x1e7   :  { %315 = dma.done.wait [#allocation4], 128  }
 0x1e8   :  { %316 = vsyncadd [#allocation4], 4294967168 }
 0x1e9   :  { %155 = vsyncpa [#allocation3], 1 }
 0x1ea   :  { %156 = vsyncpa [#allocation6], 1 }
 0x1eb   :  { %157 = vsyncpa [#allocation4], 1 }

</bundles_post_ra>
